<compile_context>
chip_gen: v7x
topology: tpu7x:2x2x1
jax: 0.10.0
libtpu: 0.0.40
codegen_flags: <defaults>
</compile_context>

<pallas_src>
import functools

import jax
import jax.numpy as jnp
from jax import lax
from jax.experimental import pallas as pl
from jax.experimental.pallas import tpu as pltpu


def _cdiv(a, b):
    return -(-a // b)


def _rln_kernel(x_ref, wb_ref, out_ref, mean_ref, std_ref, *, eps, inv_n):
    """One grid step: `bb` full samples resident in VMEM.

    x_ref   : (bb, C, HW)  x.dtype  -- full (C, HW) extents, masked ragged tiles
    wb_ref  : (C, 2)       f32      -- column 0 = weight, column 1 = bias
    out_ref : (bb, C, HW)  x.dtype
    mean_ref, std_ref : (bb, 1, 1) f32
    """
    x = x_ref[...].astype(jnp.float32)

    # Single data sweep for the statistics: sum and sum-of-squares together.
    # jnp.sum over the ref value is masked to the logical extent, so ragged
    # lane tiles / partial batch blocks contribute nothing spurious.
    s1 = jnp.sum(x, axis=(1, 2), keepdims=True)        # (bb, 1, 1)
    s2 = jnp.sum(x * x, axis=(1, 2), keepdims=True)    # (bb, 1, 1)
    mean = s1 * inv_n
    var = s2 * inv_n - mean * mean                     # biased variance
    std = jnp.sqrt(var + eps)
    inv_std = lax.rsqrt(var + eps)                     # EUP slot, VALU stays clear

    w = wb_ref[:, 0:1]                                 # (C, 1)
    b = wb_ref[:, 1:2]                                 # (C, 1)
    alpha = w[None, :, :] * inv_std                    # (bb, C, 1)
    beta = b[None, :, :] - mean * alpha                # (bb, C, 1)

    # Fused normalize + per-channel affine: one scale/shift pass over the block.
    out_ref[...] = (x * alpha + beta).astype(out_ref.dtype)

    mean_ref[...] = mean
    std_ref[...] = std


def _tpu_limits():
    """(physical VMEM bytes, chip has >1 TensorCore) with conservative fallbacks."""
    vmem_bytes = 64 << 20          # conservative default (v7x-sized VMEM)
    multi_tc = True                # conservative default (assume 2 TCs)
    try:
        vmem_bytes = int(pltpu.get_tpu_info().vmem_capacity_bytes)
    except Exception:
        pass
    try:
        kind = jax.devices()[0].device_kind.lower()
        if ("v5" in kind) or ("v6" in kind):
            multi_tc = False       # v5e / v6e: single TensorCore per chip
    except Exception:
        pass
    return vmem_bytes, multi_tc


def _pick_batch_block(B, per_sample_bytes, vmem_bytes, multi_tc):
    """Batch-block size targeting ~4 MiB of x per step within the VMEM budget."""
    target_bytes = 4 << 20
    # Double-buffered in + out (~4x block) plus temporaries (~6x) must stay
    # under ~75% of physical VMEM (Mosaic needs internal scratch as well).
    budget = (min(vmem_bytes, 128 << 20) * 3) // 4
    cap = max(1, min(target_bytes // max(per_sample_bytes, 1),
                     budget // max(6 * per_sample_bytes, 1)))
    bb = int(min(B, cap))
    if multi_tc and B >= 2:
        # Keep >= 2 grid steps so the second TensorCore gets work.
        bb = min(bb, _cdiv(B, 2))
        if _cdiv(B, bb) % 2 == 1:
            # Prefer an even step count so both cores get equal work, but
            # never shrink blocks more than ~2x to achieve it.
            for cand in range(bb - 1, max(bb // 2, 0), -1):
                if _cdiv(B, cand) % 2 == 0:
                    bb = cand
                    break
    return max(int(bb), 1)


def rln_forward(x, weight, bias, meta1_w, meta1_b, meta2_w, meta2_b, eps=1e-5):
    """x: (B, C, H, W).  Returns (out, rescale, rebias) matching PyTorch RLN."""
    B, C, H, W = x.shape
    HW = H * W

    # NCHW -> (B, C, HW) is a free contiguous view; no padding / output slice.
    x2 = x.reshape(B, C, HW)

    # Pack weight & bias into a single parameter block: one input stream.
    wb = jnp.stack([weight.reshape(C).astype(jnp.float32),
                    bias.reshape(C).astype(jnp.float32)], axis=-1)    # (C, 2)

    vmem_bytes, multi_tc = _tpu_limits()
    per_sample_bytes = C * HW * x.dtype.itemsize
    bb = _pick_batch_block(B, per_sample_bytes, vmem_bytes, multi_tc)
    grid = (_cdiv(B, bb),)
    block_bytes = bb * per_sample_bytes

    # Explicit scoped-VMEM budget: double-buffered in + out + params + slack,
    # capped at ~75% of the generation's physical VMEM (48 MiB v7x, 96 MiB v5e/v6e).
    vmem_ceiling = (min(vmem_bytes, 128 << 20) * 3) // 4
    vmem_limit = int(min(vmem_ceiling, max(16 << 20, 6 * block_bytes + (2 << 20))))

    kernel = functools.partial(
        _rln_kernel, eps=float(eps), inv_n=1.0 / float(C * HW))

    out2, mean_o, std_o = pl.pallas_call(
        kernel,
        out_shape=(
            jax.ShapeDtypeStruct((B, C, HW), x.dtype),
            jax.ShapeDtypeStruct((B, 1, 1), jnp.float32),
            jax.ShapeDtypeStruct((B, 1, 1), jnp.float32),
        ),
        grid_spec=pltpu.PrefetchScalarGridSpec(
            num_scalar_prefetch=0,
            grid=grid,
            in_specs=[
                pl.BlockSpec((bb, C, HW), lambda i: (i, 0, 0)),
                pl.BlockSpec((C, 2), lambda i: (0, 0)),
            ],
            out_specs=[
                pl.BlockSpec((bb, C, HW), lambda i: (i, 0, 0)),
                pl.BlockSpec((bb, 1, 1), lambda i: (i, 0, 0)),
                pl.BlockSpec((bb, 1, 1), lambda i: (i, 0, 0)),
            ],
        ),
        compiler_params=pltpu.CompilerParams(
            dimension_semantics=("parallel",),
            vmem_limit_bytes=vmem_limit,
        ),
    )(x2, wb)

    out = out2.reshape(B, C, H, W)

    # meta1 / meta2: 1x1 conv on (B,1,1,1) == per-channel affine of the scalars.
    # Done in XLA outside the kernel (avoids narrow masked-store outputs in-kernel).
    std_b = std_o.reshape(B, 1).astype(jnp.float32)
    mean_b = mean_o.reshape(B, 1).astype(jnp.float32)
    rescale = (std_b * meta1_w.reshape(1, C) + meta1_b.reshape(1, C)).reshape(B, C, 1, 1)
    rebias = (mean_b * meta2_w.reshape(1, C) + meta2_b.reshape(1, C)).reshape(B, C, 1, 1)
    return out, rescale, rebias


def _reference(x, weight, bias, m1w, m1b, m2w, m2b, eps=1e-5):
    mean = jnp.mean(x, axis=(1, 2, 3), keepdims=True)
    std = jnp.sqrt(jnp.mean((x - mean) ** 2, axis=(1, 2, 3), keepdims=True) + eps)
    normalized = (x - mean) / std
    out = normalized * weight.reshape(1, -1, 1, 1) + bias.reshape(1, -1, 1, 1)
    rescale = std * m1w.reshape(1, -1, 1, 1) + m1b.reshape(1, -1, 1, 1)
    rebias = mean * m2w.reshape(1, -1, 1, 1) + m2b.reshape(1, -1, 1, 1)
    return out, rescale, rebias


if __name__ == "__main__":
    key = jax.random.PRNGKey(0)
    B, C, H, W = 2, 4, 16, 16
    eps = 1e-5

    k_x, k_m1, k_m2 = jax.random.split(key, 3)
    x = jax.random.normal(k_x, (B, C, H, W), dtype=jnp.float32)

    # Parameter init mirroring the PyTorch module's __init__:
    weight = jnp.ones((C,), jnp.float32)                   # nn.Parameter ones (1,C,1,1)
    bias = jnp.zeros((C,), jnp.float32)                    # nn.Parameter zeros (1,C,1,1)
    # meta1 / meta2: Conv2d(1, C, 1) weights ~ trunc_normal(std=0.02), biases 1 / 0
    meta1_w = 0.02 * jax.random.truncated_normal(k_m1, -2.0, 2.0, (C,), jnp.float32)
    meta1_b = jnp.ones((C,), jnp.float32)
    meta2_w = 0.02 * jax.random.truncated_normal(k_m2, -2.0, 2.0, (C,), jnp.float32)
    meta2_b = jnp.zeros((C,), jnp.float32)

    out, rescale, rebias = rln_forward(
        x, weight, bias, meta1_w, meta1_b, meta2_w, meta2_b, eps=eps)
    jax.block_until_ready((out, rescale, rebias))

    ref_out, ref_rescale, ref_rebias = _reference(
        x, weight, bias, meta1_w, meta1_b, meta2_w, meta2_b, eps=eps)

    assert out.shape == (B, C, H, W)
    assert rescale.shape == (B, C, 1, 1)
    assert rebias.shape == (B, C, 1, 1)
    assert jnp.allclose(out, ref_out, atol=2e-5, rtol=1e-5)
    assert jnp.allclose(rescale, ref_rescale, atol=2e-5, rtol=1e-5)
    assert jnp.allclose(rebias, ref_rebias, atol=2e-5, rtol=1e-5)

    print("KERNEL_OK")
</pallas_src>

<mosaic_0001>
module attributes {stable_mosaic.version = 11 : i64} {
  func.func @_rln_kernel(%arg0: i32, %arg1: memref<1x4x256xf32, #tpu.memory_space<vmem>>, %arg2: memref<4x2xf32, #tpu.memory_space<vmem>>, %arg3: memref<1x4x256xf32, #tpu.memory_space<vmem>>, %arg4: memref<1x1x1xf32, #tpu.memory_space<vmem>>, %arg5: memref<1x1x1xf32, #tpu.memory_space<vmem>>) attributes {dimension_semantics = [#tpu.dimension_semantics<parallel>], iteration_bounds = array<i64: 2>, scalar_prefetch = 0 : i64, scratch_operands = 0 : i64, tpu.core_type = #tpu.core_type<tc>, window_params = [{transform_indices = @transform_0, window_bounds = array<i64: 1, 4, 256>}, {pipeline_mode = #tpu.pipeline_mode<synchronous>, transform_indices = @transform_1, window_bounds = array<i64: 4, 2>}, {transform_indices = @transform_2, window_bounds = array<i64: 1, 4, 256>}, {transform_indices = @transform_3, window_bounds = array<i64: 1, 1, 1>}, {transform_indices = @transform_4, window_bounds = array<i64: 1, 1, 1>}]} {
    %c0 = arith.constant 0 : index
    %c0_0 = arith.constant 0 : index
    %c0_1 = arith.constant 0 : index
    %0 = vector.load %arg1[%c0, %c0_0, %c0_1] : memref<1x4x256xf32, #tpu.memory_space<vmem>>, vector<1x4x256xf32>
    %cst = arith.constant dense<0.000000e+00> : vector<1xf32>
    %1 = vector.multi_reduction <add>, %0, %cst [1, 2] : vector<1x4x256xf32> to vector<1xf32>
    %2 = vector.shape_cast %1 : vector<1xf32> to vector<1x1x1xf32>
    %3 = arith.mulf %0, %0 : vector<1x4x256xf32>
    %cst_2 = arith.constant dense<0.000000e+00> : vector<1xf32>
    %4 = vector.multi_reduction <add>, %3, %cst_2 [1, 2] : vector<1x4x256xf32> to vector<1xf32>
    %5 = vector.shape_cast %4 : vector<1xf32> to vector<1x1x1xf32>
    %cst_3 = arith.constant 9.765625E-4 : f32
    %6 = vector.broadcast %cst_3 : f32 to vector<1x1x1xf32>
    %7 = arith.mulf %2, %6 : vector<1x1x1xf32>
    %cst_4 = arith.constant 9.765625E-4 : f32
    %8 = vector.broadcast %cst_4 : f32 to vector<1x1x1xf32>
    %9 = arith.mulf %5, %8 : vector<1x1x1xf32>
    %10 = arith.mulf %7, %7 : vector<1x1x1xf32>
    %11 = arith.subf %9, %10 : vector<1x1x1xf32>
    %cst_5 = arith.constant 9.99999974E-6 : f32
    %12 = vector.broadcast %cst_5 : f32 to vector<1x1x1xf32>
    %13 = arith.addf %11, %12 : vector<1x1x1xf32>
    %14 = math.sqrt %13 : vector<1x1x1xf32>
    %cst_6 = arith.constant 9.99999974E-6 : f32
    %15 = vector.broadcast %cst_6 : f32 to vector<1x1x1xf32>
    %16 = arith.addf %11, %15 : vector<1x1x1xf32>
    %17 = math.rsqrt %16 : vector<1x1x1xf32>
    %c0_7 = arith.constant 0 : index
    %c0_8 = arith.constant 0 : index
    %18 = vector.load %arg2[%c0_7, %c0_8] : memref<4x2xf32, #tpu.memory_space<vmem>>, vector<4x1xf32>
    %c0_9 = arith.constant 0 : index
    %c1 = arith.constant 1 : index
    %19 = vector.load %arg2[%c0_9, %c1] : memref<4x2xf32, #tpu.memory_space<vmem>>, vector<4x1xf32>
    %20 = vector.shape_cast %18 : vector<4x1xf32> to vector<1x4x1xf32>
    %21 = vector.broadcast %17 : vector<1x1x1xf32> to vector<1x4x1xf32>
    %22 = arith.mulf %20, %21 : vector<1x4x1xf32>
    %23 = vector.shape_cast %19 : vector<4x1xf32> to vector<1x4x1xf32>
    %24 = vector.broadcast %7 : vector<1x1x1xf32> to vector<1x4x1xf32>
    %25 = arith.mulf %24, %22 : vector<1x4x1xf32>
    %26 = arith.subf %23, %25 : vector<1x4x1xf32>
    %27 = vector.broadcast %22 : vector<1x4x1xf32> to vector<1x4x256xf32>
    %28 = arith.mulf %0, %27 : vector<1x4x256xf32>
    %29 = vector.broadcast %26 : vector<1x4x1xf32> to vector<1x4x256xf32>
    %30 = arith.addf %28, %29 : vector<1x4x256xf32>
    %c0_10 = arith.constant 0 : index
    %c0_11 = arith.constant 0 : index
    %c0_12 = arith.constant 0 : index
    %31 = vector.load %arg3[%c0_10, %c0_11, %c0_12] : memref<1x4x256xf32, #tpu.memory_space<vmem>>, vector<1x4x256xf32>
    tpu.vector_store %arg3[%c0_10, %c0_11, %c0_12], %30 {strides = array<i32>} : memref<1x4x256xf32, #tpu.memory_space<vmem>>, vector<1x4x256xf32>,
    %c0_13 = arith.constant 0 : index
    %c0_14 = arith.constant 0 : index
    %c0_15 = arith.constant 0 : index
    %32 = vector.load %arg4[%c0_13, %c0_14, %c0_15] : memref<1x1x1xf32, #tpu.memory_space<vmem>>, vector<1x1x1xf32>
    tpu.vector_store %arg4[%c0_13, %c0_14, %c0_15], %7 {strides = array<i32>} : memref<1x1x1xf32, #tpu.memory_space<vmem>>, vector<1x1x1xf32>,
    %c0_16 = arith.constant 0 : index
    %c0_17 = arith.constant 0 : index
    %c0_18 = arith.constant 0 : index
    %33 = vector.load %arg5[%c0_16, %c0_17, %c0_18] : memref<1x1x1xf32, #tpu.memory_space<vmem>>, vector<1x1x1xf32>
    tpu.vector_store %arg5[%c0_16, %c0_17, %c0_18], %14 {strides = array<i32>} : memref<1x1x1xf32, #tpu.memory_space<vmem>>, vector<1x1x1xf32>,
    return
  }
  func.func @transform_0(%arg0: i32) -> (i32, i32, i32) {
    %c0_i32 = arith.constant 0 : i32
    %c0_i32_0 = arith.constant 0 : i32
    %c0_i32_1 = arith.constant 0 : i32
    return %arg0, %c0_i32, %c0_i32_0 : i32, i32, i32
  }
  func.func @transform_1(%arg0: i32) -> (i32, i32) {
    %c0_i32 = arith.constant 0 : i32
    %c0_i32_0 = arith.constant 0 : i32
    %c0_i32_1 = arith.constant 0 : i32
    return %c0_i32, %c0_i32_0 : i32, i32
  }
  func.func @transform_2(%arg0: i32) -> (i32, i32, i32) {
    %c0_i32 = arith.constant 0 : i32
    %c0_i32_0 = arith.constant 0 : i32
    %c0_i32_1 = arith.constant 0 : i32
    return %arg0, %c0_i32, %c0_i32_0 : i32, i32, i32
  }
  func.func @transform_3(%arg0: i32) -> (i32, i32, i32) {
    %c0_i32 = arith.constant 0 : i32
    %c0_i32_0 = arith.constant 0 : i32
    %c0_i32_1 = arith.constant 0 : i32
    return %arg0, %c0_i32, %c0_i32_0 : i32, i32, i32
  }
  func.func @transform_4(%arg0: i32) -> (i32, i32, i32) {
    %c0_i32 = arith.constant 0 : i32
    %c0_i32_0 = arith.constant 0 : i32
    %c0_i32_1 = arith.constant 0 : i32
    return %arg0, %c0_i32, %c0_i32_0 : i32, i32, i32
  }
}

</mosaic_0001>

<bundles_post_ra>
// kernel: tpu_custom_call.1
= control target key start
LH: loop header
LB: loop body
LE: loop exit
PB: predicated region body
PF: predicated region fallthrough
CT: control target
= control target key end

     0   :  { %10 = vsyncpa [#allocation3], 0  ;;  %s838_s0 = inlined_call_operand.hbm [shape: f32[2,4,256], index: 0, kind: input, shape index: {}]   ;;  %s839_s1 = inlined_call_operand.vmem [shape: f32[4,2], index: 1, kind: input, shape index: {}]   ;;  %s840_s2 = inlined_call_operand.hbm [shape: f32[2,4,256], index: 2, kind: output, shape index: {0}]   ;;  %s841_s3 = inlined_call_operand.vmem [shape: f32[2,1,1], index: 3, kind: output, shape index: {1}]   ;;  %s842_s4 = inlined_call_operand.vmem [shape: f32[2,1,1], index: 4, kind: output, shape index: {2}]  }
   0x1   :  { %12 = vsyncpa [#allocation3 + $0x1], 0 }
   0x2   :  { %13 = vsyncpa [#allocation4], 0 }
   0x3   :  { %15 = vsyncpa [#allocation4 + $0x1], 0  ;;  %s648_s15 = smov 0   ;;  %s650_s16 = smov 0  }
   0x4   :  { %s652_s17 = smov 0   ;;  %s654_s18 = smov 0  }
   0x5 LB: > { %s669_s19 = sadd.s32 4294967295, %s615_s18   ;;  %s448_s20 = sadd.s32 4294967294, %s615_s18   ;;  %s615_s18 = sphi %s654_s18, %s857_s18   ;;  %s611_s17 = sphi %s652_s17, %s856_s17   ;;  %s607_s16 = sphi %s650_s16, %s855_s16   ;;  %s603_s15 = sphi %s648_s15, %s854_s15  }
   0x6   : > { %s673_s21 = sadd.s32 1, %s615_s18   ;;  %s28_s22 = sadd.s32 1, %s611_s17 }
   0x7   : > { %s25_s23 = ssub.s32 %s615_s18, %s673_s21  ;;  %p35_p0 = scmp.ne.s32.totalorder %s611_s17, %s607_s16 }
   0x8   : > { %p26_p1 = scmp.eq.s32.totalorder %s25_s23, 0  ;;  %p36_p2 = scmp.eq.s32.totalorder %s615_s18, 0 }
   0x9   : > { %p41_p3 = scmp.ne.s32.totalorder %s607_s16, %s603_s15  ;;  %p42_p4 = scmp.eq.s32.totalorder %s669_s19, 0 }
   0xa   : > { %s685_s24 = scalar_select %p26_p1, %s611_s17, %s28_s22  }
   0xb   : > { %p687_p5 = por %p36_p2, %p35_p0  ;;  %p691_p6 = por %p42_p4, %p41_p3 }
   0xc   : > { %p86_p7 = scmp.eq.s32.totalorder %s669_s19, 1  ;;  %p92_p8 = scmp.eq.s32.totalorder %s448_s20, 1 }
   0xd   : > { %p476_p10 = scmp.lt.s32.totalorder %s615_s18, 2  ;;  %s167_s29 = sand.u32 1, %s611_s17  }
   0xe   : > { %p698_p11 = por %p86_p7, %p35_p0  ;;  %p702_p12 = por %p92_p8, %p41_p3 }
   0xf   : > { %s462_s30 = sshll.u32 %s615_s18, 7  ;;  %s451_s5 = sshll.u32 %s167_s29, 3 }
  0x10   : > { %s846_s27 = scalar_select %p698_p11, 1, 0 }
  0x11   : > { %s847_s28 = scalar_select %p702_p12, 1, 0 }
  0x12   : > { %s711_s8 = scalar_lea.hbm %s838_s0, %s462_s30  ;;  %s171_s9 = scalar_lea.vmem [#allocation2], %s451_s5 }
  0x13   : > { %s179_s10 = sshll.u32 %s171_s9, 4  ;;  %p715_p13 = pnand %p476_p10, %p687_p5  ;;  %s719_s10 = int_to_ptr.vmem [resolvable:$true] %s179_s10 }
  0x14   : > { %s168_s12 = scalar_lea.sflag [#allocation3], %s167_s29  ;;  %s519_s13 = scalar_lea.hbm %s711_s8, 128 }
  0x15   : > { %p520_p2 = scmp.ne.s32.totalorder %s711_s8, %s519_s13  ;;  %p521_p3 = pneg %p715_p13 }
  0x16   : > { %s524_s22 = scalar_lea.hbm %s838_s0, 256  ;;  %p525_p5 = scmp.lt.u32.totalorder %s711_s8, %s838_s0 }
  0x17   : > { %p522_p4 = pnand %p521_p3, %p520_p2  ;;  %p526_p8 = scmp.lt.u32.totalorder %s524_s22, %s519_s13 }
  0x18   : > { %p528_p9 = scmp.lt.u32.totalorder %s519_s13, %s711_s8 }
  0x19   : > { %p523_p7 = pneg %p522_p4  ;;  %p527_p10 = por %p526_p8, %p525_p5 }
  0x1b   : > { %p529_p0 = por %p528_p9, %p527_p10 }
  0x1d   : > { %p530_p1 = pnand %p529_p0, %p523_p7 }
  0x1f   : > { %533 = shalt.err (!%p530_p1)
}
  0x20   : > { %s534_s29 = scalar_lea.vmem %s719_s10, 128  ;;  %s617_s30 = smov [#allocation2]  }
  0x21   : > { %p535_p2 = scmp.ne.s32.totalorder %s719_s10, %s534_s29  ;;  %s539_s5 = sshll.u32 %s617_s30, 4  ;;  %s540_s5 = int_to_ptr.vmem [resolvable:$false] %s539_s5 }
  0x22   : > { %s541_s6 = scalar_lea.vmem %s540_s5, 256  ;;  %p542_p11 = scmp.lt.s32.totalorder %s719_s10, %s540_s5 }
  0x23   : > { %p537_p4 = pnand %p535_p2, %p521_p3  ;;  %p543_p5 = scmp.lt.s32.totalorder %s541_s6, %s534_s29 }
  0x25   : > { %p538_p12 = pneg %p537_p4  ;;  %p544_p8 = por %p543_p5, %p542_p11 }
  0x27   : > { %p545_p9 = pnand %p544_p8, %p538_p12 }
  0x29   : > { %548 = shalt.err (!%p545_p9)
}
  0x2a   : > { %471 = dma.hbm_to_vmem [thread:$0]  (!%p715_p13), %s711_s8, 128, %s719_s10, %s168_s12  }
  0x2b   : > { %p849_p0 = scmp.lt.s32.totalorder %s615_s18, 3  ;;  %p850_p1 = scmp.ge.s32.totalorder %s615_s18, 1 }
  0x2d   : > { %p185_p3 = pnand %p850_p1, %p849_p0 }
  0x2e   : > { %s753_s7 = sand.u32 (!%p185_p3), 1, %s607_s16  }
  0x2f   : > { %188 = sbr.rel (%p185_p3) target bundleno = 503 (0x1f7), region = 28  ;;  %s455_s9 = sshll.u32 (!%p185_p3), %s753_s7, 3 }
  0x30   : > { %s191_s13 = scalar_lea.sflag (!%p185_p3), [#allocation3], %s753_s7  ;;  %s194_s11 = scalar_lea.vmem (!%p185_p3), [#allocation2], %s455_s9 }
  0x36   : > { %594 = dma.done.wait (%p691_p6), %s191_s13, 128  }
  0x37   : > { %596 = vsyncadd (%p691_p6), %s191_s13, 4294967168  ;;  %vm235_vm0 = vcmask 1043456   ;;  %v763_v0 = vld [vmem:[%s194_s11] sm:$0xff]  ;;  %v618_v10 = vmov 0   ;;  %p225_p6 = scmp.lt.s32.totalorder %s669_s19, 1  ;;  %vm310_vm1 = vcmask 0   ;;  %v290_v43 = vlaneseq }
  0x38   : > { %v233_v1 = vcombine.high %v763_v0, %v763_v0  ;;  %v236_v2 = vsel %vm235_vm0, %v763_v0, 0.0  ;;  %v247_v3 = vmul.f32 %v763_v0, %v763_v0  ;;  %514 = vset.pattern.permute.xlu1 %v618_v10  ;;  %v619_v30 = vmov 1   ;;  %v275_v31 = vld [vmem:[%s839_s1] sm:$0xf]  ;;  %s620_s29 = smov 1   ;;  %s463_s30 = sshll.u32 %s669_s19, 7 }
  0x39   : > { %s772_s26 = scalar_select %p225_p6, %s669_s19, 1  ;;  %515 = vset.pattern.permute.xlu0 %v619_v30  ;;  %v621_v41 = vmov 839922192   ;;  %v291_v45 = vshrl.u32 %v290_v43, 7 }
  0x3a   : > { %v237_v4 = vsel %vm235_vm0, %v233_v1, 0.0  ;;  %v249_v5 = vcombine.high %v247_v3, %v247_v3  ;;  %v251_v6 = vsel %vm235_vm0, %v247_v3, 0.0  ;;  %v288_v42 = vunpack.c.l.s4 %v621_v41  ;;  %s214_s5 = scalar_lea.vmem [#allocation5], %s455_s9  ;;  %s314_s8 = scalar_lea.sflag [#allocation4], %s753_s7 }
  0x3b   : > { %v238_v7 = vadd.f32 %v237_v4, %v236_v2  ;;  %s227_s12 = scalar_lea.vmem %s841_s3, %s772_s26  ;;  %s230_s25 = scalar_lea.vmem %s842_s4, %s772_s26 }
  0x3c   : > { %v252_v8 = vsel %vm235_vm0, %v249_v5, 0.0  ;;  %v289_v44 = vunpack.c.0.s8 %v288_v42  ;;  %s334_s6 = sshll.u32 %s214_s5, 4  ;;  %s794_s26 = scalar_lea.hbm %s840_s2, %s463_s30  ;;  %s796_s6 = int_to_ptr.vmem [resolvable:$true] %s334_s6 }
  0x3d   : > { %239 = vadd.xlane.f32.xlu0 %v238_v7  ;;  %v253_v9 = vadd.f32 %v252_v8, %v251_v6  ;;  %s549_s19 = scalar_lea.vmem %s796_s6, 128  ;;  %p851_p12 = scmp.ne.s32.totalorder %s846_s27, 0 }
  0x3e   : > { %v292_v46 = vsub.s32 %v289_v44, %v291_v45  ;;  %p550_p11 = scmp.ne.s32.totalorder %s796_s6, %s549_s19  ;;  %s622_s9 = smov [#allocation5]  }
  0x3f   : > { %s553_s10 = sshll.u32 %s622_s9, 4  ;;  %s554_s10 = int_to_ptr.vmem [resolvable:$false] %s553_s10 }
  0x40   : > { %p551_p13 = pnand %p550_p11, %p851_p12  ;;  %p556_p10 = scmp.lt.s32.totalorder %s796_s6, %s554_s10 }
  0x41   : > { %254 = vadd.xlane.f32.xlu0 %v253_v9 }
  0x42   : > { %p552_p7 = pneg %p551_p13 }
  0xca   : > { %v240_v11 = vpop.xlane.xlu0 %239 }
  0xcb   : > { %v241_v12 = vrot.slane %v240_v11, 4 }
  0xcd   : > { %v242_v13 = vadd.f32 %v241_v12, %v240_v11 }
  0xce   : > { %v255_v14 = vpop.xlane.xlu0 %254 }
  0xcf   : > { %v243_v15 = vrot.slane %v242_v13, 2  ;;  %v256_v16 = vrot.slane %v255_v14, 4 }
  0xd1   : > { %v244_v17 = vadd.f32 %v243_v15, %v242_v13  ;;  %v257_v18 = vadd.f32 %v256_v16, %v255_v14 }
  0xd3   : > { %v245_v19 = vrot.slane %v244_v17, 1  ;;  %v258_v20 = vrot.slane %v257_v18, 2 }
  0xd5   : > { %v246_v21 = vadd.f32 %v245_v19, %v244_v17  ;;  %v259_v22 = vadd.f32 %v258_v20, %v257_v18 }
  0xd7   : > { %v260_v23 = vrot.slane %v259_v22, 1  ;;  %v262_v24 = vmul.f32 0.0009765625, %v246_v21 }
  0xd9   : > { %v261_v25 = vadd.f32 %v260_v23, %v259_v22  ;;  %311 = vst.msk [vmem:[%s227_s12] sm:$0x1] %vm310_vm1, %v262_v24  ;;  %v264_v27 = vmul.f32 %v262_v24, %v262_v24  ;;  %s555_s12 = scalar_lea.vmem %s554_s10, 256 }
  0xda   : > { %p557_p2 = scmp.lt.s32.totalorder %s555_s12, %s549_s19 }
  0xdb   : > { %v263_v26 = vmul.f32 0.0009765625, %v261_v25 }
  0xdc   : > { %p558_p4 = por %p557_p2, %p556_p10 }
  0xdd   : > { %v265_v28 = vsub.f32 %v263_v26, %v264_v27 }
  0xde   : > { %p559_p5 = pnand %p558_p4, %p552_p7 }
  0xdf   : > { %v266_v29 = vadd.f32 1e-05, %v265_v28 }
  0xe1   : > { %517 = vrsqrt.f32 %v266_v29  ;;  %vm269_vm2 = vcmp.eq.f32.partialorder %v266_v29, inf  ;;  %v272_v35 = vand.u32 2147483648, %v266_v29  ;;  %vm271_vm3 = vcmp.eq.f32.partialorder %v266_v29, 0.0 }
  0xeb   : > { %v518_v32 = vpop.eup %517 }
  0xec   : > { %v276_v33 = vmul.f32 %v518_v32, %v275_v31  ;;  %v268_v34 = vmul.f32 %v518_v32, %v266_v29 }
  0xee   : > { %v277_v36 = vmul.f32 %v276_v33, %v262_v24  ;;  %v270_v37 = vsel %vm269_vm2, %v266_v29, %v268_v34 }
  0xef   : > { %v273_v38 = vsel %vm271_vm3, %v272_v35, %v270_v37 }
  0xf0   : > { %279 = vrot.lane.b32.xlu1 %v277_v36, %s620_s29  ;;  %312 = vst.msk [vmem:[%s230_s25] sm:$0x1] %vm310_vm1, %v273_v38 }
  0xf4   : > { %285 = vperm.xlu1 %514, %v276_v33  }
 0x162   : > { %v280_v39 = vpop.permute.xlu1 %279 }
 0x163   : > { %v282_v40 = vsub.f32 %v275_v31, %v280_v39 }
 0x165   : > { %298 = vperm.xlu0 %515, %v282_v40  }
 0x173   : > { %v286_v47 = vpop.permute.xlu1 %285 }
 0x174   : > { %v293_v48 = vrot.slane %v286_v47, %v292_v46 }
 0x176   : > { %v295_v50 = vmul.f32 %v293_v48, %v763_v0 }
 0x1e4   : > { %v299_v49 = vpop.permute.xlu0 %298 }
 0x1e5   : > { %v306_v51 = vrot.slane %v299_v49, %v292_v46 }
 0x1e7   : > { %v308_v52 = vadd.f32 %v306_v51, %v295_v50 }
 0x1e9   : > { %309 = vst [vmem:[%s214_s5] sm:$0xff] %v308_v52 }
 0x1ea   : > { %562 = shalt.err (!%p559_p5)
}
 0x1eb   : > { %s563_s7 = scalar_lea.hbm %s794_s26, 128  ;;  %s567_s22 = scalar_lea.hbm %s840_s2, 256 }
 0x1ec   : > { %p564_p8 = scmp.ne.s32.totalorder %s794_s26, %s563_s7  ;;  %p568_p1 = scmp.lt.u32.totalorder %s794_s26, %s840_s2 }
 0x1ed   : > { %p569_p3 = scmp.lt.u32.totalorder %s567_s22, %s563_s7  ;;  %p571_p11 = scmp.lt.u32.totalorder %s563_s7, %s794_s26 }
 0x1ee   : > { %p565_p9 = pnand %p564_p8, %p851_p12 }
 0x1ef   : > { %p570_p6 = por %p569_p3, %p568_p1 }
 0x1f0   : > { %p566_p0 = pneg %p565_p9 }
 0x1f1   : > { %p572_p13 = por %p571_p11, %p570_p6 }
 0x1f3   : > { %p573_p7 = pnand %p572_p13, %p566_p0 }
 0x1f5   : > { %576 = shalt.err (!%p573_p7)
}
 0x1f6   : > { %466 = dma.vmem_to_hbm [thread:$0]  (%p851_p12), %s796_s6, 128, %s794_s26, %s314_s8  }
 0x1f7 PF: > { %s352_s29 = sand.u32 1, %s603_s15   ;;  %p852_p10 = scmp.ne.s32.totalorder %s847_s28, 0 }
 0x1f8   : > { %p853_p2 = scmp.ge.s32.totalorder %s615_s18, 2  ;;  %s353_s30 = scalar_lea.sflag [#allocation4], %s352_s29 }
 0x1fa   : > { %p473_p4 = pnand %p853_p2, %p852_p10 }
 0x1fc   : > { %598 = dma.done.wait (!%p473_p4), %s353_s30, 128  }
 0x1fd   : > { %600 = vsyncadd (!%p473_p4), %s353_s30, 4294967168  ;;  %p18_p5 = scmp.ge.s32.totalorder %s673_s21, 4   ;;  %s854_s15 = smov %s607_s16 }
 0x1fe   : > { %s855_s16 = smov %s611_s17  ;;  %s856_s17 = smov %s685_s24 }
 0x1ff   : > { %s857_s18 = smov %s673_s21  ;;  %20 = sbr.rel (!%p18_p5) target bundleno = 5 (0x5), region = 97 }
 0x206   :  { %370 = vsyncpa [#allocation3], 1 }
 0x207   :  { %372 = vsyncpa [#allocation3 + $0x1], 1 }
 0x208   :  { %373 = vsyncpa [#allocation4], 1 }
 0x209   :  { %375 = vsyncpa [#allocation4 + $0x1], 1 }

</bundles_post_ra>
